<compile_context>
chip_gen: v7x
topology: tpu7x:2x2x1
jax: 0.10.0
libtpu: 0.0.40
codegen_flags: <defaults>
</compile_context>

<pallas_src>
import math

import jax
import jax.numpy as jnp
from jax.experimental import pallas as pl
from jax.experimental.pallas import tpu as pltpu

IN_FEATURES = 32
OUT_FEATURES = 5

GROUP = 8                      # rows fused into one lane-dense grouped row
TB_MAX = 32768                 # max original rows per tile (4096 grouped rows)
SMALL_BATCH_CUTOFF = 1024      # below this, plain XLA fused gemm wins
VMEM_LIMIT_BYTES = 32 * 1024 * 1024   # explicit scoped-VMEM limit (safe on v5e/v6e/v7x)


def _purchase_decoder_kernel(x_ref, w_ref, b_ref, o_ref):
    # Fused ReLU -> block-diagonal matmul -> bias add, all in VMEM.
    x = jnp.maximum(x_ref[...], 0.0)                        # ReLU (VPU)
    y = jnp.dot(x, w_ref[...],                              # (tbg, G*32)@(G*32, G*5) on MXU
                preferred_element_type=jnp.float32)
    o_ref[...] = (y + b_ref[...]).astype(o_ref.dtype)       # broadcast bias (1, G*5)


def init_params(key):
    """Deterministic init mirroring PyTorch nn.Linear defaults
    (kaiming-uniform weight, uniform bias with bound 1/sqrt(fan_in))."""
    k_w, k_b = jax.random.split(key)
    bound = 1.0 / math.sqrt(IN_FEATURES)
    weight = jax.random.uniform(
        k_w, (OUT_FEATURES, IN_FEATURES), jnp.float32, -bound, bound)
    bias = jax.random.uniform(
        k_b, (OUT_FEATURES,), jnp.float32, -bound, bound)
    return weight, bias


def prepare_params(weight, bias, group=GROUP):
    """Convert PyTorch-layout params (weight: (5,32), bias: (5,)) to the
    kernel-friendly layouts once, outside the per-call path."""
    w_t = jnp.asarray(weight, jnp.float32).T                    # (32, 5)
    b2d = jnp.asarray(bias, jnp.float32).reshape(1, OUT_FEATURES)
    # Block-diagonal weight: grouped row [x_0 | ... | x_{G-1}] -> [y_0 | ... | y_{G-1}]
    w_bd = jnp.kron(jnp.eye(group, dtype=jnp.float32), w_t)     # (G*32, G*5)
    b_bd = jnp.tile(b2d, (1, group))                            # (1, G*5)
    return {"w_t": w_t, "b2d": b2d, "w_bd": w_bd, "b_bd": b_bd, "group": group}


def _round_up(n, m):
    return ((n + m - 1) // m) * m


def _pallas_grouped(x_main, params):
    """Pallas path: x_main has a multiple-of-G number of rows."""
    g = params["group"]
    w_bd, b_bd = params["w_bd"], params["b_bd"]
    b_main = x_main.shape[0]
    ng = b_main // g
    kin = g * IN_FEATURES
    kout = g * OUT_FEATURES

    # Free, contiguous row-grouping reshape: (B, 32) -> (B/G, G*32).
    xg = x_main.reshape(ng, kin)

    # Tile size (grouped rows): as big as TB_MAX allows, but capped at ~half the
    # work so the grid has >= 2 steps (lets v7x split the batch across 2 TCs).
    tbg = min(TB_MAX // g, _round_up(pl.cdiv(ng, 2), 8))
    tbg = max(tbg, 8)
    grid = (pl.cdiv(ng, tbg),)

    cost = pl.CostEstimate(
        flops=2 * ng * kin * kout,                       # actual MXU work (block-diag)
        transcendentals=0,
        bytes_accessed=(xg.size + ng * kout + w_bd.size + b_bd.size) * 4,
    )

    yg = pl.pallas_call(
        _purchase_decoder_kernel,
        out_shape=jax.ShapeDtypeStruct((ng, kout), jnp.float32),
        grid=grid,
        in_specs=[
            # Streamed batch tiles (double-buffered by Pallas), lane-dense minor.
            pl.BlockSpec((tbg, kin), lambda i: (i, 0)),
            # Weight/bias: same block every step -> resident in VMEM.
            pl.BlockSpec((kin, kout), lambda i: (0, 0)),
            pl.BlockSpec((1, kout), lambda i: (0, 0)),
        ],
        out_specs=pl.BlockSpec((tbg, kout), lambda i: (i, 0)),
        compiler_params=pltpu.CompilerParams(
            dimension_semantics=("parallel",),   # megacore / 2-TC batch split
            vmem_limit_bytes=VMEM_LIMIT_BYTES,
        ),
        cost_estimate=cost,
    )(xg, w_bd, b_bd)

    # Free, contiguous ungrouping reshape: (B/G, G*5) -> (B, 5).
    return yg.reshape(b_main, OUT_FEATURES)


def purchase_decoder_inversion(x, params, *, force_pallas=False):
    """x: (B, 32) float32. Returns (B, 5) = relu(x) @ W.T + b."""
    b = x.shape[0]
    w_t, b2d = params["w_t"], params["b2d"]

    # Fast path: at small B the kernel is pure launch/step overhead;
    # let XLA fuse relu + gemm + bias instead.
    if not force_pallas and b < SMALL_BATCH_CUTOFF:
        return jnp.maximum(x, 0.0) @ w_t + b2d

    g = params["group"]
    main = (b // g) * g
    outs = []
    if main > 0:
        outs.append(_pallas_grouped(x[:main], params))
    if main < b:
        # Tiny ragged tail (< G rows): plain XLA, negligible cost.
        outs.append(jnp.maximum(x[main:], 0.0) @ w_t + b2d)
    return outs[0] if len(outs) == 1 else jnp.concatenate(outs, axis=0)


if __name__ == "__main__":
    key = jax.random.PRNGKey(0)
    k_x1, k_x2, k_p = jax.random.split(key, 3)

    weight, bias = init_params(k_p)
    params = prepare_params(weight, bias)

    def ref_fn(x):
        return jnp.maximum(x, 0.0) @ weight.T + bias

    # 1) Small, group-aligned batch forced through the Pallas path
    #    (exercises the kernel itself at a single exact-fit block).
    B1 = 64
    x1 = jax.random.normal(k_x1, (B1, IN_FEATURES), jnp.float32)
    out1 = jax.block_until_ready(
        purchase_decoder_inversion(x1, params, force_pallas=True))
    assert out1.shape == (B1, OUT_FEATURES)
    assert jnp.allclose(out1, ref_fn(x1), atol=1e-4, rtol=1e-5)

    # 2) Larger ragged batch: multi-step grid (>= 2 steps), a padded partial
    #    last block, and the ungrouped XLA tail (5 rows) + concat.
    B2 = 8 * 1000 + 5
    x2 = jax.random.normal(k_x2, (B2, IN_FEATURES), jnp.float32)
    out2 = jax.block_until_ready(purchase_decoder_inversion(x2, params))
    assert out2.shape == (B2, OUT_FEATURES)
    assert jnp.allclose(out2, ref_fn(x2), atol=1e-4, rtol=1e-5)

    # 3) Small-batch fast path (bypasses Pallas) still matches the reference.
    out3 = jax.block_until_ready(purchase_decoder_inversion(x1, params))
    assert jnp.allclose(out3, ref_fn(x1), atol=1e-4, rtol=1e-5)

    print("KERNEL_OK")
</pallas_src>

<mosaic_0001>
module attributes {stable_mosaic.version = 11 : i64} {
  func.func @_purchase_decoder_kernel(%arg0: i32, %arg1: memref<8x256xf32, #tpu.memory_space<vmem>>, %arg2: memref<256x40xf32, #tpu.memory_space<vmem>>, %arg3: memref<1x40xf32, #tpu.memory_space<vmem>>, %arg4: memref<8x40xf32, #tpu.memory_space<vmem>>) attributes {dimension_semantics = [#tpu.dimension_semantics<parallel>], iteration_bounds = array<i64: 1>, scalar_prefetch = 0 : i64, scratch_operands = 0 : i64, tpu.core_type = #tpu.core_type<tc>, window_params = [{transform_indices = @transform_0, window_bounds = array<i64: 8, 256>}, {pipeline_mode = #tpu.pipeline_mode<synchronous>, transform_indices = @transform_1, window_bounds = array<i64: 256, 40>}, {pipeline_mode = #tpu.pipeline_mode<synchronous>, transform_indices = @transform_2, window_bounds = array<i64: 1, 40>}, {transform_indices = @transform_3, window_bounds = array<i64: 8, 40>}]} {
    %c0 = arith.constant 0 : index
    %c0_0 = arith.constant 0 : index
    %0 = vector.load %arg1[%c0, %c0_0] : memref<8x256xf32, #tpu.memory_space<vmem>>, vector<8x256xf32>
    %cst = arith.constant 0.000000e+00 : f32
    %1 = vector.broadcast %cst : f32 to vector<8x256xf32>
    %2 = arith.maximumf %0, %1 : vector<8x256xf32>
    %c0_1 = arith.constant 0 : index
    %c0_2 = arith.constant 0 : index
    %3 = vector.load %arg2[%c0_1, %c0_2] : memref<256x40xf32, #tpu.memory_space<vmem>>, vector<256x40xf32>
    %cst_3 = arith.constant dense<0.000000e+00> : vector<8x40xf32>
    %4 = tpu.matmul %2, %3, %cst_3 {dimension_numbers = #tpu.dot_dimension_numbers<[1], [0], [0], [1], [0, 0, 1, 1], [], []>} : vector<8x256xf32>, vector<256x40xf32>, vector<8x40xf32> -> vector<8x40xf32>
    %c0_4 = arith.constant 0 : index
    %c0_5 = arith.constant 0 : index
    %5 = vector.load %arg3[%c0_4, %c0_5] : memref<1x40xf32, #tpu.memory_space<vmem>>, vector<1x40xf32>
    %6 = vector.broadcast %5 : vector<1x40xf32> to vector<8x40xf32>
    %7 = arith.addf %4, %6 : vector<8x40xf32>
    %c0_6 = arith.constant 0 : index
    %c0_7 = arith.constant 0 : index
    %8 = vector.load %arg4[%c0_6, %c0_7] : memref<8x40xf32, #tpu.memory_space<vmem>>, vector<8x40xf32>
    tpu.vector_store %arg4[%c0_6, %c0_7], %7 {strides = array<i32>} : memref<8x40xf32, #tpu.memory_space<vmem>>, vector<8x40xf32>,
    return
  }
  func.func @transform_0(%arg0: i32) -> (i32, i32) {
    %c0_i32 = arith.constant 0 : i32
    %c0_i32_0 = arith.constant 0 : i32
    return %arg0, %c0_i32 : i32, i32
  }
  func.func @transform_1(%arg0: i32) -> (i32, i32) {
    %c0_i32 = arith.constant 0 : i32
    %c0_i32_0 = arith.constant 0 : i32
    %c0_i32_1 = arith.constant 0 : i32
    return %c0_i32, %c0_i32_0 : i32, i32
  }
  func.func @transform_2(%arg0: i32) -> (i32, i32) {
    %c0_i32 = arith.constant 0 : i32
    %c0_i32_0 = arith.constant 0 : i32
    %c0_i32_1 = arith.constant 0 : i32
    return %c0_i32, %c0_i32_0 : i32, i32
  }
  func.func @transform_3(%arg0: i32) -> (i32, i32) {
    %c0_i32 = arith.constant 0 : i32
    %c0_i32_0 = arith.constant 0 : i32
    return %arg0, %c0_i32 : i32, i32
  }
}

</mosaic_0001>

<bundles_post_ra>
// kernel: tpu_custom_call.1
= control target key start
LH: loop header
LB: loop body
LE: loop exit
PB: predicated region body
PF: predicated region fallthrough
CT: control target
= control target key end

     0   :  { %s375_s0 = inlined_call_operand.vmem [shape: f32[8,256], index: 0, kind: input, shape index: {}]   ;;  %s376_s1 = inlined_call_operand.vmem [shape: f32[256,40], index: 1, kind: input, shape index: {}]   ;;  %s377_s2 = inlined_call_operand.vmem [shape: f32[1,40], index: 2, kind: input, shape index: {}]   ;;  %s378_s3 = inlined_call_operand.hbm [shape: f32[8,40], index: 3, kind: output, shape index: {}]  }
   0x1   :  { %v35_v0 = vld [vmem:[%s376_s1 + $0x80] sm:$0xff]  ;;  %v36_v1 = vld [vmem:[%s376_s1 + $0x88] sm:$0xff]  ;;  %v37_v5 = vld [vmem:[%s376_s1 + $0x90] sm:$0xff] }
   0x2   :  { %v19_v2 = vld [vmem:[%s376_s1] sm:$0xff]  ;;  %v180_v3 = vpack.c.bf16 %v36_v1, %v35_v0  ;;  %v20_v4 = vld [vmem:[%s376_s1 + $0x8] sm:$0xff]  ;;  %v38_v6 = vld [vmem:[%s376_s1 + $0x98] sm:$0xff] }
   0x3   :  { %v182_v7 = vpack.c.bf16 %v20_v4, %v19_v2  ;;  %v184_v8 = vpack.c.bf16 %v38_v6, %v37_v5  ;;  %v21_v9 = vld [vmem:[%s376_s1 + $0x10] sm:$0xff]  ;;  %v22_v10 = vld [vmem:[%s376_s1 + $0x18] sm:$0xff]  ;;  %v39_v11 = vld [vmem:[%s376_s1 + $0xa0] sm:$0xff] }
   0x4   :  { %181 = vmatprep.subr.bf16.mxu0 %v180_v3  ;;  %v40_v12 = vld [vmem:[%s376_s1 + $0xa8] sm:$0xff]  ;;  %v186_v13 = vpack.c.bf16 %v22_v10, %v21_v9  ;;  %v23_v15 = vld [vmem:[%s376_s1 + $0x20] sm:$0xff]  ;;  %v41_v17 = vld [vmem:[%s376_s1 + $0xb0] sm:$0xff] }
   0x5   :  { %183 = vmatpush3.bf16.msra.mxu0 %v182_v7  ;;  %v188_v14 = vpack.c.bf16 %v40_v12, %v39_v11  ;;  %v24_v16 = vld [vmem:[%s376_s1 + $0x28] sm:$0xff]  ;;  %v42_v18 = vld [vmem:[%s376_s1 + $0xb8] sm:$0xff]  ;;  %v25_v21 = vld [vmem:[%s376_s1 + $0x30] sm:$0xff] }
   0x6   :  { %185 = vmatprep.subr.bf16.mxu0 %v184_v8  ;;  %v190_v19 = vpack.c.bf16 %v24_v16, %v23_v15  ;;  %v192_v20 = vpack.c.bf16 %v42_v18, %v41_v17  ;;  %v26_v22 = vld [vmem:[%s376_s1 + $0x38] sm:$0xff]  ;;  %v43_v23 = vld [vmem:[%s376_s1 + $0xc0] sm:$0xff]  ;;  %v44_v24 = vld [vmem:[%s376_s1 + $0xc8] sm:$0xff] }
   0x7   :  { %v16_v25 = vld [vmem:[%s375_s0 + $0x8] sm:$0xff] }
   0x8   :  { %v18_v26 = vmax.f32 %v16_v25, 0.0 }
   0x9   :  { %187 = vmatpush3.bf16.msra.mxu0 %v186_v13 }
   0xa   :  { %189 = vmatprep.subr.bf16.mxu0 %v188_v14 }
   0xb   :  { %8 = vsyncpa [#allocation3], 0  ;;  %v194_v27 = vpack.c.bf16 %v26_v22, %v25_v21  ;;  %v196_v28 = vpack.c.bf16 %v44_v24, %v43_v23  ;;  %v27_v29 = vld [vmem:[%s376_s1 + $0x40] sm:$0xff]  ;;  %v28_v30 = vld [vmem:[%s376_s1 + $0x48] sm:$0xff]  ;;  %122 = vmatprep.mubr.f32.mxu0 %v18_v26  ;;  %s237_s28 = smov [#allocation2]   ;;  %vm128_vm0 = vcmask 326656  }
   0xc   :  { %v45_v31 = vld [vmem:[%s376_s1 + $0xd0] sm:$0xff]  ;;  %v46_v32 = vld [vmem:[%s376_s1 + $0xd8] sm:$0xff]  ;;  %v198_v33 = vpack.c.bf16 %v28_v30, %v27_v29  ;;  %v47_v37 = vld [vmem:[%s376_s1 + $0xe0] sm:$0xff]  ;;  %s136_s29 = sshll.u32 %s237_s28, 4  ;;  %s137_s29 = int_to_ptr.vmem [resolvable:$true] %s136_s29 }
   0xd   :  { %191 = vmatpush3.bf16.msra.mxu0 %v190_v19  ;;  %v200_v34 = vpack.c.bf16 %v46_v32, %v45_v31  ;;  %v29_v35 = vld [vmem:[%s376_s1 + $0x50] sm:$0xff]  ;;  %v30_v36 = vld [vmem:[%s376_s1 + $0x58] sm:$0xff]  ;;  %v48_v38 = vld [vmem:[%s376_s1 + $0xe8] sm:$0xff]  ;;  %p218_p1 = scmp.lt.s32.totalorder %s137_s29, %s137_s29 }
   0xe   :  { %193 = vmatprep.subr.bf16.mxu0 %v192_v20  ;;  %v202_v39 = vpack.c.bf16 %v30_v36, %v29_v35  ;;  %v204_v40 = vpack.c.bf16 %v48_v38, %v47_v37  ;;  %v31_v41 = vld [vmem:[%s376_s1 + $0x60] sm:$0xff]  ;;  %v32_v42 = vld [vmem:[%s376_s1 + $0x68] sm:$0xff]  ;;  %v49_v43 = vld [vmem:[%s376_s1 + $0xf0] sm:$0xff] }
   0xf   :  { %v50_v44 = vld [vmem:[%s376_s1 + $0xf8] sm:$0xff]  ;;  %v206_v45 = vpack.c.bf16 %v32_v42, %v31_v41  ;;  %v33_v47 = vld [vmem:[%s376_s1 + $0x70] sm:$0xff]  ;;  %v15_v50 = vld [vmem:[%s375_s0] sm:$0xff] }
  0x10   :  { %v208_v46 = vpack.c.bf16 %v50_v44, %v49_v43  ;;  %v34_v48 = vld [vmem:[%s376_s1 + $0x78] sm:$0xff]  ;;  %v17_v51 = vmax.f32 %v15_v50, 0.0  ;;  %v144_v53 = vld [vmem:[%s377_s2] ss:$0 sm:$0xff]  ;;  %s213_s1 = scalar_lea.vmem %s137_s29, 128 }
  0x11   :  { %195 = vmatpush3.bf16.msra.mxu0 %v194_v27  ;;  %v210_v49 = vpack.c.bf16 %v34_v48, %v33_v47  ;;  %p214_p0 = scmp.ne.s32.totalorder %s137_s29, %s213_s1  ;;  %p219_p2 = scmp.lt.s32.totalorder %s213_s1, %s213_s1 }
  0x12   :  { %197 = vmatprep.subr.bf16.mxu0 %v196_v28 }
  0x13   :  { %p220_p3 = por %p219_p2, %p218_p1 }
  0x15   :  { %199 = vmatpush3.bf16.msra.mxu0 %v198_v33  ;;  %p221_p4 = pnand %p220_p3, %p214_p0 }
  0x16   :  { %201 = vmatprep.subr.bf16.mxu0 %v200_v34 }
  0x19   :  { %203 = vmatpush3.bf16.msra.mxu0 %v202_v39 }
  0x1a   :  { %205 = vmatprep.subr.bf16.mxu0 %v204_v40 }
  0x1d   :  { %207 = vmatpush3.bf16.msra.mxu0 %v206_v45 }
  0x1e   :  { %209 = vmatprep.subr.bf16.mxu0 %v208_v46 }
  0x21   :  { %211 = vmatpush3.bf16.msra.mxu0 %v210_v49 }
  0x24   :  { %123 = vmatmul.mubr.f32.vlgmr.msra.gmra.mrb[0].mxu0 %v17_v51 }
  0xf7   :  { %v177_v52 = vpop.f32.mrb[0].mxu0 }
  0xf8   :  { %v178_v54 = vpop.f32.mrb[1].mxu0 }
  0xf9   :  { %v179_v55 = vadd.f32 %v178_v54, %v177_v52 }
  0xfb   :  { %v125_v56 = vadd.f32 %v179_v55, %v144_v53 }
  0xfd   :  { %129 = vst.msk [vmem:[#allocation2] sm:$0xff] %vm128_vm0, %v125_v56 }
  0xfe   :  { %224 = shalt.err (!%p221_p4)
}
  0xff   :  { %s225_s4 = scalar_lea.hbm %s378_s3, 128 }
 0x100   :  { %p226_p5 = scmp.ne.s32.totalorder %s378_s3, %s225_s4  ;;  %p229_p6 = scmp.lt.u32.totalorder %s225_s4, %s378_s3 }
 0x102   :  { %p231_p7 = pnand %p229_p6, %p226_p5 }
 0x104   :  { %234 = shalt.err (!%p231_p7)
}
 0x105   :  { %139 = dma.vmem_to_hbm [thread:$0]  %s137_s29, 128, %s378_s3, [#allocation3]  }
 0x106   :  { %235 = dma.done.wait [#allocation3], 128  }
 0x107   :  { %236 = vsyncadd [#allocation3], 4294967168 }
 0x108   :  { %143 = vsyncpa [#allocation3], 1 }

</bundles_post_ra>
